<compile_context>
chip_gen: v7x
topology: tpu7x:2x2x1
jax: 0.10.0
libtpu: 0.0.40
codegen_flags: <defaults>
</compile_context>

<pallas_src>
from functools import partial

import jax
import jax.numpy as jnp
import numpy as np
from jax.experimental import pallas as pl
from jax.experimental.pallas import tpu as pltpu

_LANES = 128
_CHUNK = 64  # rows per register-resident inner chunk (8 f32 vregs of bce)


def _round_up(x: int, m: int) -> int:
    return ((x + m - 1) // m) * m


def _default_core_splits() -> int:
    """1 TensorCore on v5e/v6e; 2 on v7x (and megacore v4/v5p)."""
    try:
        kind = jax.devices()[0].device_kind.lower()
    except Exception:
        return 1
    return 2 if any(k in kind for k in ("v7", "v4", "v5p")) else 1


def _reweigh_loss_kernel(pred_ref, code_ref, out_ref):
    """Accumulate per-group masked-BCE partial sums and counts into out_ref.

    out_ref block is (1, 64, 128), VMEM-resident across the reduction axis:
      rows  0..31 : per-(sublane,lane) partial BCE sums, 8 rows per group (g = row//8)
      rows 32..63 : per-(sublane,lane) partial counts,   8 rows per group
    """
    t = pl.program_id(1)

    @pl.when(t == 0)
    def _():
        out_ref[...] = jnp.zeros_like(out_ref)

    br = pred_ref.shape[0]
    n_chunks = br // _CHUNK

    def chunk_body(c, acc):
        i = pl.multiple_of(c * _CHUNK, _CHUNK)
        pred = pred_ref[pl.ds(i, _CHUNK), :]                     # (CHUNK,128) f32
        code = code_ref[pl.ds(i, _CHUNK), :].astype(jnp.int32)   # widen int8 once/chunk
        # Bit 0 of the group code is the BCE target
        # (male_less=0, male_more=1, female_less=2, female_more=3 -> target = code & 1).
        p_eff = jnp.where((code & 1) == 1, pred, 1.0 - pred)
        # Single log per element; clamp at -100 like torch F.binary_cross_entropy.
        bce = -jnp.maximum(jnp.log(p_eff), -100.0)
        bce3 = bce.reshape(_CHUNK // 8, 8, _LANES)               # vreg-aligned view
        new = list(acc)
        for g in range(4):
            m = (code == g).reshape(_CHUNK // 8, 8, _LANES)      # padding(-1) -> no group
            new[g] = acc[g] + jnp.sum(jnp.where(m, bce3, 0.0), axis=0)      # (8,128)
            new[4 + g] = acc[4 + g] + jnp.sum(m.astype(jnp.float32), axis=0)
        return tuple(new)

    init = tuple(jnp.zeros((8, _LANES), jnp.float32) for _ in range(8))
    acc = jax.lax.fori_loop(0, n_chunks, chunk_body, init, unroll=True)

    # Aligned full-vreg accumulator read-modify-writes (no masked sublane stores).
    for q in range(8):
        out_ref[0, q * 8:(q + 1) * 8, :] += acc[q]


@partial(jax.jit, static_argnames=("block_rows", "num_core_splits"))
def reweigh_loss(label_pred, label_true, reweigh_matrix, *,
                 block_rows: int = 1024, num_core_splits=None):
    if num_core_splits is None:
        num_core_splits = _default_core_splits()
    n = label_pred.shape[0]

    block_rows = max(_CHUNK, _round_up(block_rows, _CHUNK))
    rows_needed = pl.cdiv(n, _LANES)
    br = min(block_rows, _round_up(rows_needed, _CHUNK))         # shrink tile for small N
    # Only split across cores if each core gets at least one (mostly) real tile.
    splits = max(1, min(num_core_splits, pl.cdiv(rows_needed, br)))
    rows = _round_up(rows_needed, br * splits)
    tiles_per_core = rows // (br * splits)
    n_pad = rows * _LANES

    # ---- lane-dense pred plane (pad with 0.5: finite bce, masked out anyway) ----
    pred = label_pred.astype(jnp.float32).reshape(-1)
    pred = jnp.pad(pred, (0, n_pad - n), constant_values=0.5).reshape(rows, _LANES)

    # ---- lane-dense int8 group-code plane (replaces torch.equal grouping loop) ----
    lt = label_true
    c0, c1, c2 = lt[:, 0], lt[:, 1], lt[:, 2]
    code = jnp.full((n,), -1, jnp.int8)
    code = jnp.where((c0 == 0) & (c1 == 0) & (c2 == 1), 0, code)   # male_less
    code = jnp.where((c0 == 1) & (c1 == 0) & (c2 == 1), 1, code)   # male_more
    code = jnp.where((c0 == 0) & (c1 == 1) & (c2 == 0), 2, code)   # female_less
    code = jnp.where((c0 == 1) & (c1 == 1) & (c2 == 0), 3, code)   # female_more
    code = jnp.pad(code, (0, n_pad - n), constant_values=-1).reshape(rows, _LANES)

    idx = lambda c, t: (c * tiles_per_core + t, 0)
    partials = pl.pallas_call(
        _reweigh_loss_kernel,
        out_shape=jax.ShapeDtypeStruct((splits, 64, _LANES), jnp.float32),
        grid_spec=pltpu.PrefetchScalarGridSpec(
            num_scalar_prefetch=0,
            grid=(splits, tiles_per_core),
            in_specs=[
                pl.BlockSpec((br, _LANES), idx),                 # pred plane (f32)
                pl.BlockSpec((br, _LANES), idx),                 # group-code plane (i8)
            ],
            out_specs=pl.BlockSpec((1, 64, _LANES), lambda c, t: (c, 0, 0)),
        ),
        compiler_params=pltpu.CompilerParams(
            dimension_semantics=("parallel", "arbitrary")),
    )(pred, code)

    # ---- tiny epilogue: core/lane/sublane reduce, per-group mean, reweighted combine ----
    per_q = jnp.sum(partials, axis=(0, 2)).reshape(8, 8).sum(axis=1)   # (8,)
    sums, counts = per_q[:4], per_q[4:]
    # Empty groups contribute 0 (the PyTorch loop would fail on them).
    means = sums / jnp.maximum(counts, 1.0)                     # [L_ml, L_mm, L_fl, L_fm]
    w = reweigh_matrix.astype(jnp.float32).reshape(-1)          # [w00, w01, w10, w11]
    return jnp.sum(w * means) / 4.0


def _reference(label_pred, label_true, reweigh_matrix):
    pred = np.asarray(label_pred, np.float64).reshape(-1)
    true = np.asarray(label_true, np.float64)
    w = np.asarray(reweigh_matrix, np.float64)
    patterns = {
        "ml": np.array([0.0, 0.0, 1.0]), "mm": np.array([1.0, 0.0, 1.0]),
        "fl": np.array([0.0, 1.0, 0.0]), "fm": np.array([1.0, 1.0, 0.0]),
    }

    def bce_mean(mask):
        p = pred[mask]
        t = true[mask, 0]
        lp = np.maximum(np.log(p), -100.0)
        l1p = np.maximum(np.log(1.0 - p), -100.0)
        return np.mean(-(t * lp + (1.0 - t) * l1p))

    losses = {k: bce_mean(np.all(true == v, axis=1)) for k, v in patterns.items()}
    return (w[0, 0] * losses["ml"] + w[0, 1] * losses["mm"]
            + w[1, 0] * losses["fl"] + w[1, 1] * losses["fm"]) / 4.0


if __name__ == "__main__":
    key = jax.random.PRNGKey(0)
    patterns = jnp.array([[0., 0., 1.],    # male_less
                          [1., 0., 1.],    # male_more
                          [0., 1., 0.],    # female_less
                          [1., 1., 0.]],   # female_more
                         dtype=jnp.float32)

    k_pred, k_w, k_grp, k_pred2, k_grp3, k_pred3 = jax.random.split(key, 6)
    reweigh_matrix = jnp.abs(jax.random.normal(k_w, (2, 2), jnp.float32)) + 0.5

    # ---- test 1: tiny batch (N=8, two samples per group) ----
    N1 = 8
    label_true1 = jnp.tile(patterns, (2, 1))                                # (8, 3)
    label_pred1 = jax.nn.sigmoid(jax.random.normal(k_pred, (N1, 1), jnp.float32))
    loss1 = jax.block_until_ready(reweigh_loss(label_pred1, label_true1, reweigh_matrix))
    ref1 = _reference(label_pred1, label_true1, reweigh_matrix)
    assert np.isfinite(float(loss1))
    np.testing.assert_allclose(float(loss1), float(ref1), rtol=1e-4, atol=1e-6)

    # ---- test 2: batch exercising padding (N=5000, random groups, single tile) ----
    N2 = 5000
    grp2 = jax.random.randint(k_grp, (N2,), 0, 4).at[:4].set(jnp.arange(4))
    label_true2 = patterns[grp2]                                            # (5000, 3)
    label_pred2 = jax.nn.sigmoid(jax.random.normal(k_pred2, (N2, 1), jnp.float32))
    loss2 = jax.block_until_ready(reweigh_loss(label_pred2, label_true2, reweigh_matrix))
    ref2 = _reference(label_pred2, label_true2, reweigh_matrix)
    np.testing.assert_allclose(float(loss2), float(ref2), rtol=1e-4, atol=1e-6)

    # ---- test 3: larger batch with small tiles -> multiple grid steps per core ----
    N3 = 40000
    grp3 = jax.random.randint(k_grp3, (N3,), 0, 4).at[:4].set(jnp.arange(4))
    label_true3 = patterns[grp3]                                            # (40000, 3)
    label_pred3 = jax.nn.sigmoid(jax.random.normal(k_pred3, (N3, 1), jnp.float32))
    loss3 = jax.block_until_ready(
        reweigh_loss(label_pred3, label_true3, reweigh_matrix, block_rows=64))
    ref3 = _reference(label_pred3, label_true3, reweigh_matrix)
    np.testing.assert_allclose(float(loss3), float(ref3), rtol=2e-4, atol=1e-6)

    print("KERNEL_OK")
</pallas_src>

<mosaic_0001>
module attributes {stable_mosaic.version = 11 : i64} {
  func.func @_reweigh_loss_kernel(%arg0: i32, %arg1: i32, %arg2: memref<64x128xf32, #tpu.memory_space<vmem>>, %arg3: memref<64x128xi8, #tpu.memory_space<vmem>>, %arg4: memref<1x64x128xf32, #tpu.memory_space<vmem>>) attributes {dimension_semantics = [#tpu.dimension_semantics<parallel>, #tpu.dimension_semantics<arbitrary>], iteration_bounds = array<i64: 1, 1>, scalar_prefetch = 0 : i64, scratch_operands = 0 : i64, tpu.core_type = #tpu.core_type<tc>, window_params = [{transform_indices = @transform_0, window_bounds = array<i64: 64, 128>}, {transform_indices = @transform_1, window_bounds = array<i64: 64, 128>}, {transform_indices = @transform_2, window_bounds = array<i64: 1, 64, 128>}]} {
    %c0_i32 = arith.constant 0 : i32
    %0 = arith.cmpi eq, %arg1, %c0_i32 : i32
    %1 = arith.extui %0 : i1 to i32
    %c0_i32_0 = arith.constant 0 : i32
    %2 = arith.cmpi ne, %1, %c0_i32_0 : i32
    scf.if %2 {
      %cst_70 = arith.constant 0.000000e+00 : f32
      %123 = vector.broadcast %cst_70 : f32 to vector<1x64x128xf32>
      %c0_71 = arith.constant 0 : index
      %c0_72 = arith.constant 0 : index
      %c0_73 = arith.constant 0 : index
      %124 = vector.load %arg4[%c0_71, %c0_72, %c0_73] : memref<1x64x128xf32, #tpu.memory_space<vmem>>, vector<1x64x128xf32>
      tpu.vector_store %arg4[%c0_71, %c0_72, %c0_73], %123 {strides = array<i32>} : memref<1x64x128xf32, #tpu.memory_space<vmem>>, vector<1x64x128xf32>,
    } else {
    }
    %cst = arith.constant 0.000000e+00 : f32
    %3 = vector.broadcast %cst : f32 to vector<8x128xf32>
    %cst_1 = arith.constant 0.000000e+00 : f32
    %4 = vector.broadcast %cst_1 : f32 to vector<8x128xf32>
    %cst_2 = arith.constant 0.000000e+00 : f32
    %5 = vector.broadcast %cst_2 : f32 to vector<8x128xf32>
    %cst_3 = arith.constant 0.000000e+00 : f32
    %6 = vector.broadcast %cst_3 : f32 to vector<8x128xf32>
    %cst_4 = arith.constant 0.000000e+00 : f32
    %7 = vector.broadcast %cst_4 : f32 to vector<8x128xf32>
    %cst_5 = arith.constant 0.000000e+00 : f32
    %8 = vector.broadcast %cst_5 : f32 to vector<8x128xf32>
    %cst_6 = arith.constant 0.000000e+00 : f32
    %9 = vector.broadcast %cst_6 : f32 to vector<8x128xf32>
    %cst_7 = arith.constant 0.000000e+00 : f32
    %10 = vector.broadcast %cst_7 : f32 to vector<8x128xf32>
    %c0_i32_8 = arith.constant 0 : i32
    %c64_i32 = arith.constant 64 : i32
    %11 = arith.muli %c0_i32_8, %c64_i32 : i32
    %12 = tpu.assume_multiple %11, 64 : i32
    %13 = arith.index_cast %12 : i32 to index
    %c0 = arith.constant 0 : index
    %14 = vector.load %arg2[%13, %c0] : memref<64x128xf32, #tpu.memory_space<vmem>>, vector<64x128xf32>
    %15 = arith.index_cast %12 : i32 to index
    %c0_9 = arith.constant 0 : index
    %16 = vector.load %arg3[%15, %c0_9] : memref<64x128xi8, #tpu.memory_space<vmem>>, vector<64x128xi8>
    %17 = arith.extsi %16 : vector<64x128xi8> to vector<64x128xi32>
    %c1_i32 = arith.constant 1 : i32
    %18 = vector.broadcast %c1_i32 : i32 to vector<64x128xi32>
    %19 = arith.andi %17, %18 : vector<64x128xi32>
    %c1_i32_10 = arith.constant 1 : i32
    %20 = vector.broadcast %c1_i32_10 : i32 to vector<64x128xi32>
    %21 = arith.cmpi eq, %19, %20 : vector<64x128xi32>
    %cst_11 = arith.constant 1.000000e+00 : f32
    %22 = vector.broadcast %cst_11 : f32 to vector<64x128xf32>
    %23 = arith.subf %22, %14 : vector<64x128xf32>
    %24 = arith.select %21, %14, %23 : vector<64x128xi1>, vector<64x128xf32>
    %25 = math.log %24 : vector<64x128xf32>
    %cst_12 = arith.constant -1.000000e+02 : f32
    %26 = vector.broadcast %cst_12 : f32 to vector<64x128xf32>
    %27 = arith.maximumf %25, %26 : vector<64x128xf32>
    %cst_13 = arith.constant 0.000000e+00 : f32
    %28 = vector.broadcast %cst_13 : f32 to vector<64x128xf32>
    %29 = arith.subf %28, %27 : vector<64x128xf32>
    %30 = vector.shape_cast %29 : vector<64x128xf32> to vector<8x8x128xf32>
    %c0_i32_14 = arith.constant 0 : i32
    %31 = vector.broadcast %c0_i32_14 : i32 to vector<64x128xi32>
    %32 = arith.cmpi eq, %17, %31 : vector<64x128xi32>
    %33 = vector.shape_cast %32 : vector<64x128xi1> to vector<8x8x128xi1>
    %cst_15 = arith.constant 0.000000e+00 : f32
    %34 = vector.broadcast %cst_15 : f32 to vector<8x8x128xf32>
    %35 = arith.select %33, %30, %34 : vector<8x8x128xi1>, vector<8x8x128xf32>
    %cst_16 = arith.constant dense<0.000000e+00> : vector<8x128xf32>
    %36 = vector.multi_reduction <add>, %35, %cst_16 [0] : vector<8x8x128xf32> to vector<8x128xf32>
    %37 = arith.addf %3, %36 : vector<8x128xf32>
    %38 = arith.extui %33 : vector<8x8x128xi1> to vector<8x8x128xi32>
    %39 = arith.sitofp %38 : vector<8x8x128xi32> to vector<8x8x128xf32>
    %cst_17 = arith.constant dense<0.000000e+00> : vector<8x128xf32>
    %40 = vector.multi_reduction <add>, %39, %cst_17 [0] : vector<8x8x128xf32> to vector<8x128xf32>
    %41 = arith.addf %7, %40 : vector<8x128xf32>
    %c1_i32_18 = arith.constant 1 : i32
    %42 = vector.broadcast %c1_i32_18 : i32 to vector<64x128xi32>
    %43 = arith.cmpi eq, %17, %42 : vector<64x128xi32>
    %44 = vector.shape_cast %43 : vector<64x128xi1> to vector<8x8x128xi1>
    %cst_19 = arith.constant 0.000000e+00 : f32
    %45 = vector.broadcast %cst_19 : f32 to vector<8x8x128xf32>
    %46 = arith.select %44, %30, %45 : vector<8x8x128xi1>, vector<8x8x128xf32>
    %cst_20 = arith.constant dense<0.000000e+00> : vector<8x128xf32>
    %47 = vector.multi_reduction <add>, %46, %cst_20 [0] : vector<8x8x128xf32> to vector<8x128xf32>
    %48 = arith.addf %4, %47 : vector<8x128xf32>
    %49 = arith.extui %44 : vector<8x8x128xi1> to vector<8x8x128xi32>
    %50 = arith.sitofp %49 : vector<8x8x128xi32> to vector<8x8x128xf32>
    %cst_21 = arith.constant dense<0.000000e+00> : vector<8x128xf32>
    %51 = vector.multi_reduction <add>, %50, %cst_21 [0] : vector<8x8x128xf32> to vector<8x128xf32>
    %52 = arith.addf %8, %51 : vector<8x128xf32>
    %c2_i32 = arith.constant 2 : i32
    %53 = vector.broadcast %c2_i32 : i32 to vector<64x128xi32>
    %54 = arith.cmpi eq, %17, %53 : vector<64x128xi32>
    %55 = vector.shape_cast %54 : vector<64x128xi1> to vector<8x8x128xi1>
    %cst_22 = arith.constant 0.000000e+00 : f32
    %56 = vector.broadcast %cst_22 : f32 to vector<8x8x128xf32>
    %57 = arith.select %55, %30, %56 : vector<8x8x128xi1>, vector<8x8x128xf32>
    %cst_23 = arith.constant dense<0.000000e+00> : vector<8x128xf32>
    %58 = vector.multi_reduction <add>, %57, %cst_23 [0] : vector<8x8x128xf32> to vector<8x128xf32>
    %59 = arith.addf %5, %58 : vector<8x128xf32>
    %60 = arith.extui %55 : vector<8x8x128xi1> to vector<8x8x128xi32>
    %61 = arith.sitofp %60 : vector<8x8x128xi32> to vector<8x8x128xf32>
    %cst_24 = arith.constant dense<0.000000e+00> : vector<8x128xf32>
    %62 = vector.multi_reduction <add>, %61, %cst_24 [0] : vector<8x8x128xf32> to vector<8x128xf32>
    %63 = arith.addf %9, %62 : vector<8x128xf32>
    %c3_i32 = arith.constant 3 : i32
    %64 = vector.broadcast %c3_i32 : i32 to vector<64x128xi32>
    %65 = arith.cmpi eq, %17, %64 : vector<64x128xi32>
    %66 = vector.shape_cast %65 : vector<64x128xi1> to vector<8x8x128xi1>
    %cst_25 = arith.constant 0.000000e+00 : f32
    %67 = vector.broadcast %cst_25 : f32 to vector<8x8x128xf32>
    %68 = arith.select %66, %30, %67 : vector<8x8x128xi1>, vector<8x8x128xf32>
    %cst_26 = arith.constant dense<0.000000e+00> : vector<8x128xf32>
    %69 = vector.multi_reduction <add>, %68, %cst_26 [0] : vector<8x8x128xf32> to vector<8x128xf32>
    %70 = arith.addf %6, %69 : vector<8x128xf32>
    %71 = arith.extui %66 : vector<8x8x128xi1> to vector<8x8x128xi32>
    %72 = arith.sitofp %71 : vector<8x8x128xi32> to vector<8x8x128xf32>
    %cst_27 = arith.constant dense<0.000000e+00> : vector<8x128xf32>
    %73 = vector.multi_reduction <add>, %72, %cst_27 [0] : vector<8x8x128xf32> to vector<8x128xf32>
    %74 = arith.addf %10, %73 : vector<8x128xf32>
    %c1_i32_28 = arith.constant 1 : i32
    %c0_29 = arith.constant 0 : index
    %c0_30 = arith.constant 0 : index
    %c0_31 = arith.constant 0 : index
    %75 = vector.load %arg4[%c0_29, %c0_30, %c0_31] : memref<1x64x128xf32, #tpu.memory_space<vmem>>, vector<1x8x128xf32>
    %76 = vector.shape_cast %75 : vector<1x8x128xf32> to vector<8x128xf32>
    %77 = arith.addf %76, %37 : vector<8x128xf32>
    %c0_32 = arith.constant 0 : index
    %c0_33 = arith.constant 0 : index
    %c0_34 = arith.constant 0 : index
    %78 = vector.load %arg4[%c0_32, %c0_33, %c0_34] : memref<1x64x128xf32, #tpu.memory_space<vmem>>, vector<1x8x128xf32>
    %79 = vector.shape_cast %78 : vector<1x8x128xf32> to vector<8x128xf32>
    %80 = vector.shape_cast %77 : vector<8x128xf32> to vector<1x8x128xf32>
    tpu.vector_store %arg4[%c0_32, %c0_33, %c0_34], %80 {strides = array<i32>} : memref<1x64x128xf32, #tpu.memory_space<vmem>>, vector<1x8x128xf32>,
    %c0_35 = arith.constant 0 : index
    %c8 = arith.constant 8 : index
    %c0_36 = arith.constant 0 : index
    %81 = vector.load %arg4[%c0_35, %c8, %c0_36] : memref<1x64x128xf32, #tpu.memory_space<vmem>>, vector<1x8x128xf32>
    %82 = vector.shape_cast %81 : vector<1x8x128xf32> to vector<8x128xf32>
    %83 = arith.addf %82, %48 : vector<8x128xf32>
    %c0_37 = arith.constant 0 : index
    %c8_38 = arith.constant 8 : index
    %c0_39 = arith.constant 0 : index
    %84 = vector.load %arg4[%c0_37, %c8_38, %c0_39] : memref<1x64x128xf32, #tpu.memory_space<vmem>>, vector<1x8x128xf32>
    %85 = vector.shape_cast %84 : vector<1x8x128xf32> to vector<8x128xf32>
    %86 = vector.shape_cast %83 : vector<8x128xf32> to vector<1x8x128xf32>
    tpu.vector_store %arg4[%c0_37, %c8_38, %c0_39], %86 {strides = array<i32>} : memref<1x64x128xf32, #tpu.memory_space<vmem>>, vector<1x8x128xf32>,
    %c0_40 = arith.constant 0 : index
    %c16 = arith.constant 16 : index
    %c0_41 = arith.constant 0 : index
    %87 = vector.load %arg4[%c0_40, %c16, %c0_41] : memref<1x64x128xf32, #tpu.memory_space<vmem>>, vector<1x8x128xf32>
    %88 = vector.shape_cast %87 : vector<1x8x128xf32> to vector<8x128xf32>
    %89 = arith.addf %88, %59 : vector<8x128xf32>
    %c0_42 = arith.constant 0 : index
    %c16_43 = arith.constant 16 : index
    %c0_44 = arith.constant 0 : index
    %90 = vector.load %arg4[%c0_42, %c16_43, %c0_44] : memref<1x64x128xf32, #tpu.memory_space<vmem>>, vector<1x8x128xf32>
    %91 = vector.shape_cast %90 : vector<1x8x128xf32> to vector<8x128xf32>
    %92 = vector.shape_cast %89 : vector<8x128xf32> to vector<1x8x128xf32>
    tpu.vector_store %arg4[%c0_42, %c16_43, %c0_44], %92 {strides = array<i32>} : memref<1x64x128xf32, #tpu.memory_space<vmem>>, vector<1x8x128xf32>,
    %c0_45 = arith.constant 0 : index
    %c24 = arith.constant 24 : index
    %c0_46 = arith.constant 0 : index
    %93 = vector.load %arg4[%c0_45, %c24, %c0_46] : memref<1x64x128xf32, #tpu.memory_space<vmem>>, vector<1x8x128xf32>
    %94 = vector.shape_cast %93 : vector<1x8x128xf32> to vector<8x128xf32>
    %95 = arith.addf %94, %70 : vector<8x128xf32>
    %c0_47 = arith.constant 0 : index
    %c24_48 = arith.constant 24 : index
    %c0_49 = arith.constant 0 : index
    %96 = vector.load %arg4[%c0_47, %c24_48, %c0_49] : memref<1x64x128xf32, #tpu.memory_space<vmem>>, vector<1x8x128xf32>
    %97 = vector.shape_cast %96 : vector<1x8x128xf32> to vector<8x128xf32>
    %98 = vector.shape_cast %95 : vector<8x128xf32> to vector<1x8x128xf32>
    tpu.vector_store %arg4[%c0_47, %c24_48, %c0_49], %98 {strides = array<i32>} : memref<1x64x128xf32, #tpu.memory_space<vmem>>, vector<1x8x128xf32>,
    %c0_50 = arith.constant 0 : index
    %c32 = arith.constant 32 : index
    %c0_51 = arith.constant 0 : index
    %99 = vector.load %arg4[%c0_50, %c32, %c0_51] : memref<1x64x128xf32, #tpu.memory_space<vmem>>, vector<1x8x128xf32>
    %100 = vector.shape_cast %99 : vector<1x8x128xf32> to vector<8x128xf32>
    %101 = arith.addf %100, %41 : vector<8x128xf32>
    %c0_52 = arith.constant 0 : index
    %c32_53 = arith.constant 32 : index
    %c0_54 = arith.constant 0 : index
    %102 = vector.load %arg4[%c0_52, %c32_53, %c0_54] : memref<1x64x128xf32, #tpu.memory_space<vmem>>, vector<1x8x128xf32>
    %103 = vector.shape_cast %102 : vector<1x8x128xf32> to vector<8x128xf32>
    %104 = vector.shape_cast %101 : vector<8x128xf32> to vector<1x8x128xf32>
    tpu.vector_store %arg4[%c0_52, %c32_53, %c0_54], %104 {strides = array<i32>} : memref<1x64x128xf32, #tpu.memory_space<vmem>>, vector<1x8x128xf32>,
    %c0_55 = arith.constant 0 : index
    %c40 = arith.constant 40 : index
    %c0_56 = arith.constant 0 : index
    %105 = vector.load %arg4[%c0_55, %c40, %c0_56] : memref<1x64x128xf32, #tpu.memory_space<vmem>>, vector<1x8x128xf32>
    %106 = vector.shape_cast %105 : vector<1x8x128xf32> to vector<8x128xf32>
    %107 = arith.addf %106, %52 : vector<8x128xf32>
    %c0_57 = arith.constant 0 : index
    %c40_58 = arith.constant 40 : index
    %c0_59 = arith.constant 0 : index
    %108 = vector.load %arg4[%c0_57, %c40_58, %c0_59] : memref<1x64x128xf32, #tpu.memory_space<vmem>>, vector<1x8x128xf32>
    %109 = vector.shape_cast %108 : vector<1x8x128xf32> to vector<8x128xf32>
    %110 = vector.shape_cast %107 : vector<8x128xf32> to vector<1x8x128xf32>
    tpu.vector_store %arg4[%c0_57, %c40_58, %c0_59], %110 {strides = array<i32>} : memref<1x64x128xf32, #tpu.memory_space<vmem>>, vector<1x8x128xf32>,
    %c0_60 = arith.constant 0 : index
    %c48 = arith.constant 48 : index
    %c0_61 = arith.constant 0 : index
    %111 = vector.load %arg4[%c0_60, %c48, %c0_61] : memref<1x64x128xf32, #tpu.memory_space<vmem>>, vector<1x8x128xf32>
    %112 = vector.shape_cast %111 : vector<1x8x128xf32> to vector<8x128xf32>
    %113 = arith.addf %112, %63 : vector<8x128xf32>
    %c0_62 = arith.constant 0 : index
    %c48_63 = arith.constant 48 : index
    %c0_64 = arith.constant 0 : index
    %114 = vector.load %arg4[%c0_62, %c48_63, %c0_64] : memref<1x64x128xf32, #tpu.memory_space<vmem>>, vector<1x8x128xf32>
    %115 = vector.shape_cast %114 : vector<1x8x128xf32> to vector<8x128xf32>
    %116 = vector.shape_cast %113 : vector<8x128xf32> to vector<1x8x128xf32>
    tpu.vector_store %arg4[%c0_62, %c48_63, %c0_64], %116 {strides = array<i32>} : memref<1x64x128xf32, #tpu.memory_space<vmem>>, vector<1x8x128xf32>,
    %c0_65 = arith.constant 0 : index
    %c56 = arith.constant 56 : index
    %c0_66 = arith.constant 0 : index
    %117 = vector.load %arg4[%c0_65, %c56, %c0_66] : memref<1x64x128xf32, #tpu.memory_space<vmem>>, vector<1x8x128xf32>
    %118 = vector.shape_cast %117 : vector<1x8x128xf32> to vector<8x128xf32>
    %119 = arith.addf %118, %74 : vector<8x128xf32>
    %c0_67 = arith.constant 0 : index
    %c56_68 = arith.constant 56 : index
    %c0_69 = arith.constant 0 : index
    %120 = vector.load %arg4[%c0_67, %c56_68, %c0_69] : memref<1x64x128xf32, #tpu.memory_space<vmem>>, vector<1x8x128xf32>
    %121 = vector.shape_cast %120 : vector<1x8x128xf32> to vector<8x128xf32>
    %122 = vector.shape_cast %119 : vector<8x128xf32> to vector<1x8x128xf32>
    tpu.vector_store %arg4[%c0_67, %c56_68, %c0_69], %122 {strides = array<i32>} : memref<1x64x128xf32, #tpu.memory_space<vmem>>, vector<1x8x128xf32>,
    return
  }
  func.func @transform_0(%arg0: i32, %arg1: i32) -> (i32, i32) {
    %c1_i32 = arith.constant 1 : i32
    %0 = arith.muli %arg0, %c1_i32 : i32
    %1 = arith.addi %0, %arg1 : i32
    %c0_i32 = arith.constant 0 : i32
    %c0_i32_0 = arith.constant 0 : i32
    return %1, %c0_i32 : i32, i32
  }
  func.func @transform_1(%arg0: i32, %arg1: i32) -> (i32, i32) {
    %c1_i32 = arith.constant 1 : i32
    %0 = arith.muli %arg0, %c1_i32 : i32
    %1 = arith.addi %0, %arg1 : i32
    %c0_i32 = arith.constant 0 : i32
    %c0_i32_0 = arith.constant 0 : i32
    return %1, %c0_i32 : i32, i32
  }
  func.func @transform_2(%arg0: i32, %arg1: i32) -> (i32, i32, i32) {
    %c0_i32 = arith.constant 0 : i32
    %c0_i32_0 = arith.constant 0 : i32
    %c0_i32_1 = arith.constant 0 : i32
    return %arg0, %c0_i32, %c0_i32_0 : i32, i32, i32
  }
}

</mosaic_0001>

<bundles_post_ra>
// kernel: reweigh_loss.1
= control target key start
LH: loop header
LB: loop body
LE: loop exit
PB: predicated region body
PF: predicated region fallthrough
CT: control target
= control target key end

     0   :  { %v430_v47 = vmov 0.0   ;;  %s764_s0 = inlined_call_operand.vmem [shape: f32[64,128], index: 0, kind: input, shape index: {}]   ;;  %s765_s1 = inlined_call_operand.vmem [shape: s8[64,128], index: 1, kind: input, shape index: {}]   ;;  %s766_s2 = inlined_call_operand.vmem [shape: f32[1,64,128], index: 2, kind: output, shape index: {}]  }
   0x1   :  { %v67_v0 = vld [vmem:[%s764_s0] sm:$0xff]  ;;  %v68_v1 = vld [vmem:[%s764_s0 + $0x8] sm:$0xff]  ;;  %v69_v5 = vld [vmem:[%s764_s0 + $0x10] sm:$0xff] }
   0x2   :  { %v75_v2 = vld [vmem:[%s765_s1] sm:$0xff]  ;;  %v101_v3 = vsub.f32 1.0, %v67_v0  ;;  %v102_v4 = vsub.f32 1.0, %v68_v1  ;;  %v70_v6 = vld [vmem:[%s764_s0 + $0x18] sm:$0xff]  ;;  %v76_v7 = vld [vmem:[%s765_s1 + $0x8] sm:$0xff]  ;;  %v103_v24 = vsub.f32 1.0, %v69_v5 }
   0x3   :  { %v464_v8 = vunpack.c.0.s8 %v75_v2  ;;  %v466_v9 = vunpack.c.1.s8 %v75_v2  ;;  %v468_v10 = vunpack.c.2.s8 %v75_v2  ;;  %v470_v11 = vunpack.c.3.s8 %v75_v2  ;;  %v71_v16 = vld [vmem:[%s764_s0 + $0x20] sm:$0xff]  ;;  %v72_v21 = vld [vmem:[%s764_s0 + $0x28] sm:$0xff]  ;;  %v73_v26 = vld [vmem:[%s764_s0 + $0x30] sm:$0xff] }
   0x4   :  { %v472_v12 = vunpack.c.0.s8 %v76_v7  ;;  %v474_v13 = vunpack.c.1.s8 %v76_v7  ;;  %v476_v14 = vunpack.c.2.s8 %v76_v7  ;;  %v478_v15 = vunpack.c.3.s8 %v76_v7  ;;  %v74_v28 = vld [vmem:[%s764_s0 + $0x38] sm:$0xff] }
   0x5   :  { %v85_v17 = vand.u32 1, %v464_v8  ;;  %v86_v18 = vand.u32 1, %v466_v9  ;;  %v87_v19 = vand.u32 1, %v468_v10  ;;  %v88_v20 = vand.u32 1, %v470_v11 }
   0x6   :  { %v89_v22 = vand.u32 1, %v472_v12  ;;  %v90_v23 = vand.u32 1, %v474_v13  ;;  %v104_v25 = vsub.f32 1.0, %v70_v6  ;;  %v91_v27 = vand.u32 1, %v476_v14 }
   0x7   :  { %vm93_vm0 = vcmp.eq.s32.totalorder %v85_v17, 1  ;;  %vm94_vm1 = vcmp.eq.s32.totalorder %v86_v18, 1  ;;  %vm95_vm2 = vcmp.eq.s32.totalorder %v87_v19, 1  ;;  %v92_v29 = vand.u32 1, %v478_v15 }
   0x8   :  { %vm96_vm3 = vcmp.eq.s32.totalorder %v88_v20, 1  ;;  %v105_v30 = vsub.f32 1.0, %v71_v16  ;;  %vm97_vm4 = vcmp.eq.s32.totalorder %v89_v22, 1  ;;  %v106_v31 = vsub.f32 1.0, %v72_v21 }
   0x9   :  { %v109_v32 = vsel %vm93_vm0, %v67_v0, %v101_v3  ;;  %v110_v33 = vsel %vm94_vm1, %v68_v1, %v102_v4  ;;  %vm98_vm5 = vcmp.eq.s32.totalorder %v90_v23, 1  ;;  %v107_v34 = vsub.f32 1.0, %v73_v26 }
   0xa   :  { %v111_v35 = vsel %vm95_vm2, %v69_v5, %v103_v24  ;;  %vm99_vm6 = vcmp.eq.s32.totalorder %v91_v27, 1  ;;  %v108_v36 = vsub.f32 1.0, %v74_v28  ;;  %v112_v37 = vsel %vm96_vm3, %v70_v6, %v104_v25 }
   0xb   :  { %414 = vlog2.f32 %v109_v32  ;;  %vm100_vm7 = vcmp.eq.s32.totalorder %v92_v29, 1  ;;  %v113_v38 = vsel %vm97_vm4, %v71_v16, %v105_v30  ;;  %v114_v39 = vsel %vm98_vm5, %v72_v21, %v106_v31 }
   0xc   :  { %416 = vlog2.f32 %v110_v33  ;;  %v115_v40 = vsel %vm99_vm6, %v73_v26, %v107_v34  ;;  %v116_v41 = vsel %vm100_vm7, %v74_v28, %v108_v36  ;;  %vm149_vm8 = vcmp.eq.s32.totalorder %v464_v8, 0 }
   0xd   :  { %418 = vlog2.f32 %v111_v35  ;;  %vm150_vm9 = vcmp.eq.s32.totalorder %v466_v9, 0  ;;  %vm151_vm10 = vcmp.eq.s32.totalorder %v468_v10, 0  ;;  %vm152_vm11 = vcmp.eq.s32.totalorder %v470_v11, 0 }
   0xe   :  { %420 = vlog2.f32 %v112_v37  ;;  %vm153_vm12 = vcmp.eq.s32.totalorder %v472_v12, 0  ;;  %vm154_vm13 = vcmp.eq.s32.totalorder %v474_v13, 0  ;;  %vm767_vm14 = vcmp.eq.s32.totalorder %v476_v14, 0 }
   0xf   :  { %422 = vlog2.f32 %v113_v38  ;;  %vm156_vm15 = vcmp.eq.s32.totalorder %v478_v15, 0  ;;  %vm197_vm0 = vcmp.eq.s32.totalorder %v464_v8, 1  ;;  %vm198_vm1 = vcmp.eq.s32.totalorder %v466_v9, 1 }
  0x10   :  { %424 = vlog2.f32 %v114_v39  ;;  %vm199_vm2 = vcmp.eq.s32.totalorder %v468_v10, 1  ;;  %v381_v48 = vsel %vm149_vm8, 1.0, %v430_v47  ;;  %v382_v49 = vsel %vm150_vm9, 1.0, %v430_v47 }
  0x11   :  { %426 = vlog2.f32 %v115_v40  ;;  %vm200_vm3 = vcmp.eq.s32.totalorder %v470_v11, 1  ;;  %v521_v53 = vsel %vm151_vm10, 1.0, %v430_v47  ;;  %v526_v54 = vsel %vm152_vm11, 1.0, %v430_v47 }
  0x12   :  { %428 = vlog2.f32 %v116_v41  ;;  %v533_v58 = vsel %vm153_vm12, 1.0, %v430_v47  ;;  %v538_v59 = vsel %vm154_vm13, 1.0, %v430_v47  ;;  %v548_v0 = vsel %vm767_vm14, 1.0, %v430_v47 }
  0x13   :  { %v189_v5 = vadd.f32 %v382_v49, %v381_v48  ;;  %vm248_vm5 = vcmp.eq.s32.totalorder %v470_v11, 2  ;;  %vm204_vm4 = vcmp.eq.s32.totalorder %v478_v15, 1  ;;  %vm249_vm14 = vcmp.eq.s32.totalorder %v472_v12, 2 }
  0x14   :  { %vm251_vm6 = vcmp.eq.s32.totalorder %v476_v14, 2  ;;  %vm295_vm7 = vcmp.eq.s32.totalorder %v468_v10, 3  ;;  %v582_v30 = vsel %vm156_vm15, 1.0, %v430_v47  ;;  %v389_v36 = vsel %vm197_vm0, 1.0, %v430_v47 }
  0x15   :  { %v415_v42 = vpop.eup %414  ;;  %v390_v37 = vsel %vm198_vm1, 1.0, %v430_v47  ;;  %v391_v38 = vsel %vm199_vm2, 1.0, %v430_v47 }
  0x16   :  { %v417_v43 = vpop.eup %416  ;;  %v118_v44 = vmul.f32 0.6931472, %v415_v42  ;;  %v190_v42 = vadd.f32 %v521_v53, %v189_v5 }
  0x17   :  { %v419_v45 = vpop.eup %418  ;;  %v120_v46 = vmul.f32 0.6931472, %v417_v43 }
  0x18   :  { %v421_v50 = vpop.eup %420  ;;  %v122_v51 = vmul.f32 0.6931472, %v419_v45  ;;  %v133_v52 = vmax.f32 %v118_v44, -100.0 }
  0x19   :  { %v423_v55 = vpop.eup %422  ;;  %v124_v56 = vmul.f32 0.6931472, %v421_v50  ;;  %v134_v57 = vmax.f32 %v120_v46, -100.0  ;;  %v392_v46 = vsel %vm200_vm3, 1.0, %v430_v47 }
  0x1a   :  { %v425_v60 = vpop.eup %424  ;;  %v126_v61 = vmul.f32 0.6931472, %v423_v55  ;;  %v135_v62 = vmax.f32 %v122_v51, -100.0  ;;  %v540_v63 = vsub.f32 0.0, %v133_v52 }
  0x1b   :  { %v427_v1 = vpop.eup %426  ;;  %v128_v2 = vmul.f32 0.6931472, %v425_v60  ;;  %v136_v3 = vmax.f32 %v124_v56, -100.0  ;;  %v550_v4 = vsub.f32 0.0, %v134_v57 }
  0x1c   :  { %v429_v6 = vpop.eup %428  ;;  %v130_v7 = vmul.f32 0.6931472, %v427_v1  ;;  %v137_v16 = vmax.f32 %v126_v61, -100.0  ;;  %v553_v17 = vsub.f32 0.0, %v135_v62  ;;  %v157_v18 = vsel %vm149_vm8, %v540_v63, 0.0 }
  0x1d   :  { %v132_v19 = vmul.f32 0.6931472, %v429_v6  ;;  %v138_v20 = vmax.f32 %v128_v2, -100.0  ;;  %v561_v21 = vsub.f32 0.0, %v136_v3  ;;  %v158_v22 = vsel %vm150_vm9, %v550_v4, 0.0 }
  0x1e   :  { %v139_v23 = vmax.f32 %v130_v7, -100.0  ;;  %v568_v24 = vsub.f32 0.0, %v137_v16  ;;  %v159_v25 = vsel %vm151_vm10, %v553_v17, 0.0  ;;  %v165_v26 = vadd.f32 %v158_v22, %v157_v18 }
  0x1f   :  { %vm250_vm8 = vcmp.eq.s32.totalorder %v474_v13, 2  ;;  %v140_v27 = vmax.f32 %v132_v19, -100.0  ;;  %v146_v28 = vsub.f32 0.0, %v138_v20  ;;  %v160_v29 = vsel %vm152_vm11, %v561_v21, 0.0 }
  0x20   :  { %v147_v31 = vsub.f32 0.0, %v139_v23  ;;  %v166_v32 = vadd.f32 %v165_v26, %v159_v25  ;;  %v205_v33 = vsel %vm197_vm0, %v540_v63, 0.0  ;;  %v206_v34 = vsel %vm198_vm1, %v550_v4, 0.0 }
  0x21   :  { %vm252_vm9 = vcmp.eq.s32.totalorder %v478_v15, 2  ;;  %vm296_vm10 = vcmp.eq.s32.totalorder %v470_v11, 3  ;;  %v161_v35 = vsel %vm153_vm12, %v568_v24, 0.0  ;;  %v148_v39 = vsub.f32 0.0, %v140_v27 }
  0x22   :  { %v167_v40 = vadd.f32 %v166_v32, %v160_v29  ;;  %v207_v41 = vsel %vm199_vm2, %v553_v17, 0.0  ;;  %vm298_vm12 = vcmp.eq.s32.totalorder %v474_v13, 3  ;;  %v162_v43 = vsel %vm154_vm13, %v146_v28, 0.0 }
  0x23   :  { %v208_v44 = vsel %vm200_vm3, %v561_v21, 0.0  ;;  %v213_v45 = vadd.f32 %v206_v34, %v205_v33  ;;  %vm768_vm1 = vcmp.eq.s32.totalorder %v476_v14, 0  ;;  %vm769_vm2 = vcmp.eq.s32.totalorder %v464_v8, 2 }
  0x24   :  { %v163_v48 = vsel %vm768_vm1, %v147_v31, 0.0  ;;  %v168_v49 = vadd.f32 %v167_v40, %v161_v35  ;;  %v253_v50 = vsel %vm769_vm2, %v540_v63, 0.0  ;;  %vm770_vm13 = vcmp.eq.s32.totalorder %v466_v9, 2 }
  0x25   :  { %v254_v51 = vsel %vm770_vm13, %v550_v4, 0.0  ;;  %vm771_vm11 = vcmp.eq.s32.totalorder %v472_v12, 1  ;;  %vm772_vm0 = vcmp.eq.s32.totalorder %v474_v13, 1  ;;  %v214_v55 = vadd.f32 %v213_v45, %v207_v41 }
  0x26   :  { %v209_v52 = vsel %vm771_vm11, %v568_v24, 0.0  ;;  %v210_v53 = vsel %vm772_vm0, %v146_v28, 0.0  ;;  %vm773_vm3 = vcmp.eq.s32.totalorder %v468_v10, 2  ;;  %v164_v57 = vsel %vm156_vm15, %v148_v39, 0.0 }
  0x27   :  { %v255_v56 = vsel %vm773_vm3, %v553_v17, 0.0  ;;  %v169_v60 = vadd.f32 %v168_v49, %v162_v43  ;;  %vm774_vm1 = vcmp.eq.s32.totalorder %v476_v14, 1  ;;  %v261_v62 = vadd.f32 %v254_v51, %v253_v50 }
  0x28   :  { %v211_v61 = vsel %vm774_vm1, %v147_v31, 0.0  ;;  %v215_v1 = vadd.f32 %v214_v55, %v208_v44  ;;  %v256_v2 = vsel %vm248_vm5, %v561_v21, 0.0  ;;  %vm775_vm11 = vcmp.eq.s32.totalorder %v464_v8, 3 }
  0x29   :  { %v301_v3 = vsel %vm775_vm11, %v540_v63, 0.0  ;;  %vm776_vm0 = vcmp.eq.s32.totalorder %v466_v9, 3  ;;  %v170_v6 = vadd.f32 %v169_v60, %v163_v48  ;;  %v212_v7 = vsel %vm204_vm4, %v148_v39, 0.0 }
  0x2a   :  { %v302_v5 = vsel %vm776_vm0, %v550_v4, 0.0  ;;  %v257_v16 = vsel %vm249_vm14, %v568_v24, 0.0  ;;  %v262_v18 = vadd.f32 %v261_v62, %v255_v56  ;;  %v216_v19 = vadd.f32 %v215_v1, %v209_v52 }
  0x2b   :  { %v258_v20 = vsel %vm250_vm8, %v146_v28, 0.0  ;;  %v259_v63 = vsel %vm251_vm6, %v147_v31, 0.0  ;;  %v303_v4 = vsel %vm295_vm7, %v553_v17, 0.0  ;;  %v171_v22 = vadd.f32 %v170_v6, %v164_v57 }
  0x2c   :  { %v263_v23 = vadd.f32 %v262_v18, %v256_v2  ;;  %v309_v25 = vadd.f32 %v302_v5, %v301_v3  ;;  %v191_v26 = vadd.f32 %v526_v54, %v190_v42  ;;  %v217_v27 = vadd.f32 %v216_v19, %v210_v53 }
  0x2d   :  { %v260_v29 = vsel %vm252_vm9, %v148_v39, 0.0  ;;  %v304_v32 = vsel %vm296_vm10, %v561_v21, 0.0  ;;  %vm777_vm15 = vcmp.eq.s32.totalorder %v472_v12, 3  ;;  %v306_v54 = vsel %vm298_vm12, %v146_v28, 0.0  ;;  %343 = vst [vmem:[%s766_s2] sm:$0xff] %v171_v22 }
  0x2e   :  { %v305_v33 = vsel %vm777_vm15, %v568_v24, 0.0  ;;  %v264_v34 = vadd.f32 %v263_v23, %v257_v16  ;;  %v310_v35 = vadd.f32 %v309_v25, %v303_v4  ;;  %v192_v17 = vadd.f32 %v533_v58, %v191_v26 }
  0x2f   :  { %v218_v40 = vadd.f32 %v217_v27, %v211_v61  ;;  %vm778_vm2 = vcmp.eq.s32.totalorder %v476_v14, 3  ;;  %v237_v42 = vadd.f32 %v390_v37, %v389_v36  ;;  %vm779_vm13 = vcmp.eq.s32.totalorder %v478_v15, 3 }
  0x30   :  { %v307_v41 = vsel %vm778_vm2, %v147_v31, 0.0  ;;  %v265_v21 = vadd.f32 %v264_v34, %v258_v20  ;;  %v308_v24 = vsel %vm779_vm13, %v148_v39, 0.0  ;;  %v311_v43 = vadd.f32 %v310_v35, %v304_v32 }
  0x31   :  { %v193_v44 = vadd.f32 %v538_v59, %v192_v17  ;;  %v219_v58 = vadd.f32 %v218_v40, %v212_v7  ;;  %vm780_vm3 = vcmp.eq.s32.totalorder %v472_v12, 1  ;;  %v238_v45 = vadd.f32 %v391_v38, %v237_v42 }
  0x32   :  { %v393_v28 = vsel %vm780_vm3, 1.0, %v430_v47  ;;  %vm781_vm1 = vcmp.eq.s32.totalorder %v464_v8, 2  ;;  %v266_v36 = vadd.f32 %v265_v21, %v259_v63  ;;  %v312_v37 = vadd.f32 %v311_v43, %v305_v33 }
  0x33   :  { %v397_v31 = vsel %vm781_vm1, 1.0, %v430_v47  ;;  %v194_v48 = vadd.f32 %v548_v0, %v193_v44  ;;  %vm782_vm11 = vcmp.eq.s32.totalorder %v466_v9, 2  ;;  %vm783_vm0 = vcmp.eq.s32.totalorder %v474_v13, 1  ;;  %346 = vst [vmem:[%s766_s2 + $0x8] sm:$0xff] %v219_v58 }
  0x34   :  { %v398_v39 = vsel %vm782_vm11, 1.0, %v430_v47  ;;  %v394_v59 = vsel %vm783_vm0, 1.0, %v430_v47  ;;  %vm784_vm15 = vcmp.eq.s32.totalorder %v476_v14, 1  ;;  %v239_v49 = vadd.f32 %v392_v46, %v238_v45 }
  0x35   :  { %v395_v38 = vsel %vm784_vm15, 1.0, %v430_v47  ;;  %v267_v50 = vadd.f32 %v266_v36, %v260_v29  ;;  %v313_v51 = vadd.f32 %v312_v37, %v306_v54  ;;  %v195_v52 = vadd.f32 %v582_v30, %v194_v48 }
  0x36   :  { %vm785_vm2 = vcmp.eq.s32.totalorder %v468_v10, 2  ;;  %v240_v53 = vadd.f32 %v393_v28, %v239_v49  ;;  %v400_v55 = vsel %vm248_vm5, 1.0, %v430_v47  ;;  %v285_v56 = vadd.f32 %v398_v39, %v397_v31 }
  0x37   :  { %v399_v0 = vsel %vm785_vm2, 1.0, %v430_v47  ;;  %vm786_vm13 = vcmp.eq.s32.totalorder %v464_v8, 3  ;;  %v314_v57 = vadd.f32 %v313_v51, %v307_v41  ;;  %vm787_vm3 = vcmp.eq.s32.totalorder %v466_v9, 3  ;;  %349 = vst [vmem:[%s766_s2 + $0x10] sm:$0xff] %v267_v50  ;;  %355 = vst [vmem:[%s766_s2 + $0x20] sm:$0xff] %v195_v52 }
  0x38   :  { %v405_v46 = vsel %vm786_vm13, 1.0, %v430_v47  ;;  %v406_v30 = vsel %vm787_vm3, 1.0, %v430_v47  ;;  %v241_v60 = vadd.f32 %v394_v59, %v240_v53  ;;  %v286_v61 = vadd.f32 %v399_v0, %v285_v56 }
  0x39   :  { %v315_v62 = vadd.f32 %v314_v57, %v308_v24  ;;  %v396_v8 = vsel %vm204_vm4, 1.0, %v430_v47  ;;  %v401_v9 = vsel %vm249_vm14, 1.0, %v430_v47  ;;  %v407_v1 = vsel %vm295_vm7, 1.0, %v430_v47 }
  0x3a   :  { %v242_v2 = vadd.f32 %v395_v38, %v241_v60  ;;  %v287_v3 = vadd.f32 %v400_v55, %v286_v61  ;;  %v333_v5 = vadd.f32 %v406_v30, %v405_v46  ;;  %v402_v6 = vsel %vm250_vm8, 1.0, %v430_v47 }
  0x3b   :  { %v408_v7 = vsel %vm296_vm10, 1.0, %v430_v47  ;;  %352 = vst [vmem:[%s766_s2 + $0x18] sm:$0xff] %v315_v62  ;;  %v403_v10 = vsel %vm251_vm6, 1.0, %v430_v47  ;;  %vm788_vm14 = vcmp.eq.s32.totalorder %v472_v12, 3  ;;  %v404_v11 = vsel %vm252_vm9, 1.0, %v430_v47 }
  0x3c   :  { %v243_v16 = vadd.f32 %v396_v8, %v242_v2  ;;  %v288_v18 = vadd.f32 %v401_v9, %v287_v3  ;;  %v334_v19 = vadd.f32 %v407_v1, %v333_v5  ;;  %v409_v20 = vsel %vm788_vm14, 1.0, %v430_v47 }
  0x3d   :  { %v410_v22 = vsel %vm298_vm12, 1.0, %v430_v47  ;;  %vm789_vm4 = vcmp.eq.s32.totalorder %v476_v14, 3  ;;  %vm790_vm5 = vcmp.eq.s32.totalorder %v478_v15, 3 }
  0x3e   :  { %v289_v63 = vadd.f32 %v402_v6, %v288_v18  ;;  %v335_v4 = vadd.f32 %v408_v7, %v334_v19  ;;  %358 = vst [vmem:[%s766_s2 + $0x28] sm:$0xff] %v243_v16  ;;  %v411_v12 = vsel %vm789_vm4, 1.0, %v430_v47  ;;  %v412_v29 = vsel %vm790_vm5, 1.0, %v430_v47 }
  0x40   :  { %v290_v23 = vadd.f32 %v403_v10, %v289_v63  ;;  %v336_v25 = vadd.f32 %v409_v20, %v335_v4 }
  0x42   :  { %v291_v26 = vadd.f32 %v404_v11, %v290_v23  ;;  %v337_v27 = vadd.f32 %v410_v22, %v336_v25 }
  0x44   :  { %v338_v32 = vadd.f32 %v411_v12, %v337_v27  ;;  %361 = vst [vmem:[%s766_s2 + $0x30] sm:$0xff] %v291_v26 }
  0x46   :  { %v339_v13 = vadd.f32 %v412_v29, %v338_v32 }
  0x48   :  { %364 = vst [vmem:[%s766_s2 + $0x38] sm:$0xff] %v339_v13 }

</bundles_post_ra>
